<compile_context>
chip_gen: v7x
topology: tpu7x:2x2x1
jax: 0.10.0
libtpu: 0.0.40
codegen_flags: <defaults>
</compile_context>

<pallas_src>
import functools

import jax
import jax.numpy as jnp
from jax import lax
from jax.experimental import pallas as pl
from jax.experimental.pallas import tpu as pltpu


def _round_up(x: int, m: int) -> int:
    return ((x + m - 1) // m) * m


def _cdiv(a: int, b: int) -> int:
    return -(-a // b)


def _balanced_tile(dim: int, max_tile: int, align: int) -> int:
    """Largest aligned tile <= max_tile that balances tiles (minimal padding)."""
    dim_a = _round_up(dim, align)
    n_tiles = max(1, _cdiv(dim_a, max_tile))
    return _round_up(_cdiv(dim_a, n_tiles), align)


def _pad2(a, rows: int, cols: int):
    pr = rows - a.shape[0]
    pc = cols - a.shape[1]
    if pr or pc:
        a = jnp.pad(a, ((0, pr), (0, pc)))
    return a


def _dtree_kernel_single(x_ref, w_ref, s_ref, o_ref):
    """Single K-step: full feature tile, no accumulator scratch.

    x_ref: (TB, TK) inputs (native dtype, cast here), w_ref: (TK, TN)
    pre-normalized & pre-transposed weights, s_ref: (TB, 1) = 0.5/||x||,
    o_ref: (TB, TN) right_dist tile.
    """
    x = x_ref[...].astype(w_ref.dtype)
    acc = lax.dot_general(
        x, w_ref[...],
        dimension_numbers=(((1,), (0,)), ((), ())),
        preferred_element_type=jnp.float32)
    # right_dist = (1 - cos)/2 = 0.5 - (x @ w_n) * (0.5 / ||x||)
    o_ref[...] = (0.5 - acc * s_ref[...]).astype(o_ref.dtype)


def _dtree_kernel_multi(x_ref, w_ref, s_ref, o_ref, acc_ref):
    """Multi K-step: f32 VMEM accumulator across the (innermost) K axis."""
    k = pl.program_id(2)

    @pl.when(k == 0)
    def _():
        acc_ref[...] = jnp.zeros_like(acc_ref)

    x = x_ref[...].astype(w_ref.dtype)
    acc_ref[...] += lax.dot_general(
        x, w_ref[...],
        dimension_numbers=(((1,), (0,)), ((), ())),
        preferred_element_type=jnp.float32)

    @pl.when(k == pl.num_programs(2) - 1)
    def _():
        o_ref[...] = (0.5 - acc_ref[...] * s_ref[...]).astype(o_ref.dtype)


@functools.partial(
    jax.jit,
    static_argnames=("matmul_dtype", "tb", "tn", "tk", "single_k_max"))
def dtree_nodes_forward(x, right_w, *, matmul_dtype=jnp.bfloat16,
                        tb=256, tn=256, tk=2048, single_k_max=4096):
    """x: (B, *input_dim); right_w: (N, F) with F = prod(input_dim).

    Returns (right_dist, left_dist), each (B, N, 1) float32 — same semantics
    as the PyTorch DTreeNodes.forward.
    """
    b = x.shape[0]
    flat_x = x.reshape(b, -1)
    n, f = right_w.shape
    assert flat_x.shape[1] == f

    # --- Wrapper-side precompute (hoisted out of the kernel) -----------------
    # s = 0.5 / max(||x||, 1e-12) == 0.5 * rsqrt(max(||x||^2, 1e-24)), in f32.
    x32 = flat_x.astype(jnp.float32)
    half_inv = 0.5 * lax.rsqrt(
        jnp.maximum(jnp.sum(x32 * x32, axis=1, keepdims=True), 1e-24))

    # Static weight: row-normalize once (f32), cast once, pre-transpose to (F, N).
    w32 = right_w.astype(jnp.float32)
    w_inv = lax.rsqrt(jnp.maximum(jnp.sum(w32 * w32, axis=1, keepdims=True), 1e-24))
    w_t = (w32 * w_inv).astype(matmul_dtype).T          # (F, N)

    # --- Tiling ---------------------------------------------------------------
    TB = _balanced_tile(b, tb, 8)
    TN = _balanced_tile(n, tn, 128)
    b_p = _round_up(b, TB)
    n_p = _round_up(n, TN)

    # v7x megacore: ensure >= 2 parallel tiles when the batch allows it.
    if (b_p // TB) * (n_p // TN) < 2 and _round_up(b, 8) >= 16:
        TB = _round_up(_cdiv(_round_up(b, 8), 2), 8)
        b_p = _round_up(b, TB)

    f_p = _round_up(f, 128)
    single_k = f_p <= single_k_max
    TK = f_p if single_k else _balanced_tile(f, tk, 128)
    f_p = _round_up(f, TK)

    n_tiles_n = n_p // TN

    # x dtype: only pre-cast (extra HBM round-trip) if x is re-streamed for
    # many node tiles; otherwise stream native f32 and cast in-kernel.
    if n_tiles_n >= 3 and flat_x.dtype != matmul_dtype:
        x_in = flat_x.astype(matmul_dtype)
    else:
        x_in = flat_x

    # Zero-padding: padded features contribute nothing to the dot; padded
    # batch rows get s=0 -> finite 0.5 outputs that are sliced off below.
    x_k = _pad2(x_in, b_p, f_p)
    w_k = _pad2(w_t, f_p, n_p)
    s_k = _pad2(half_inv, b_p, 1)

    out_shape = jax.ShapeDtypeStruct((b_p, n_p), jnp.float32)
    compiler_params_kw = dict(vmem_limit_bytes=32 * 1024 * 1024)

    if single_k:
        grid = (b_p // TB, n_p // TN)
        right = pl.pallas_call(
            _dtree_kernel_single,
            out_shape=out_shape,
            grid_spec=pltpu.PrefetchScalarGridSpec(
                num_scalar_prefetch=0,
                grid=grid,
                in_specs=[
                    pl.BlockSpec((TB, TK), lambda i, j: (i, 0)),
                    pl.BlockSpec((TK, TN), lambda i, j: (0, j)),
                    pl.BlockSpec((TB, 1), lambda i, j: (i, 0)),
                ],
                out_specs=pl.BlockSpec((TB, TN), lambda i, j: (i, j)),
            ),
            compiler_params=pltpu.CompilerParams(
                dimension_semantics=("parallel", "parallel"),
                **compiler_params_kw),
        )(x_k, w_k, s_k)
    else:
        grid = (b_p // TB, n_p // TN, f_p // TK)
        right = pl.pallas_call(
            _dtree_kernel_multi,
            out_shape=out_shape,
            grid_spec=pltpu.PrefetchScalarGridSpec(
                num_scalar_prefetch=0,
                grid=grid,
                in_specs=[
                    pl.BlockSpec((TB, TK), lambda i, j, k: (i, k)),
                    pl.BlockSpec((TK, TN), lambda i, j, k: (k, j)),
                    pl.BlockSpec((TB, 1), lambda i, j, k: (i, 0)),
                ],
                out_specs=pl.BlockSpec((TB, TN), lambda i, j, k: (i, j)),
                scratch_shapes=[pltpu.VMEM((TB, TN), jnp.float32)],
            ),
            compiler_params=pltpu.CompilerParams(
                dimension_semantics=("parallel", "parallel", "arbitrary"),
                **compiler_params_kw),
        )(x_k, w_k, s_k)

    right_dist = right[:b, :n][..., None]
    left_dist = 1.0 - right_dist
    return right_dist, left_dist


def _reference(x, right_w):
    b = x.shape[0]
    fx = x.reshape(b, -1).astype(jnp.float32)
    xn = fx / jnp.maximum(jnp.linalg.norm(fx, axis=1, keepdims=True), 1e-12)
    wn = right_w / jnp.maximum(
        jnp.linalg.norm(right_w, axis=1, keepdims=True), 1e-12)
    right = xn @ wn.T
    right_dist = (1.0 - right) / 2.0
    left_dist = 1.0 - right_dist
    return right_dist[..., None], left_dist[..., None]


if __name__ == "__main__":
    key = jax.random.PRNGKey(0)
    kx, kw = jax.random.split(key)

    # Shapes consistent with the module: input_dim = (4, 16, 16), num_nodes = 8,
    # batch = 2  ->  F = 4*16*16 = 1024.
    batch = 2
    input_dim = (4, 16, 16)
    num_nodes = 8
    flatten_shape = 4 * 16 * 16

    x = jax.random.normal(kx, (batch,) + input_dim, dtype=jnp.float32)
    right_w = jax.random.normal(kw, (num_nodes, flatten_shape), dtype=jnp.float32)

    ref_r, ref_l = _reference(x, right_w)

    # f32 operand path, single-K kernel: tight-tolerance structural validation.
    r32, l32 = dtree_nodes_forward(x, right_w, matmul_dtype=jnp.float32)
    jax.block_until_ready((r32, l32))
    assert r32.shape == (batch, num_nodes, 1)
    assert l32.shape == (batch, num_nodes, 1)
    assert jnp.allclose(r32, ref_r, atol=1e-5, rtol=1e-5)
    assert jnp.allclose(l32, ref_l, atol=1e-5, rtol=1e-5)

    # f32 operand path, forced multi-K kernel (exercise the accumulator path).
    rmk, lmk = dtree_nodes_forward(x, right_w, matmul_dtype=jnp.float32,
                                   tk=512, single_k_max=512)
    jax.block_until_ready((rmk, lmk))
    assert jnp.allclose(rmk, ref_r, atol=1e-5, rtol=1e-5)
    assert jnp.allclose(lmk, ref_l, atol=1e-5, rtol=1e-5)

    # Default bf16-operand path (MXU-friendly, f32 norm + f32 accumulation):
    # relaxed tolerance for bf16 operand rounding.
    rbf, lbf = dtree_nodes_forward(x, right_w)
    jax.block_until_ready((rbf, lbf))
    assert rbf.shape == (batch, num_nodes, 1)
    assert lbf.shape == (batch, num_nodes, 1)
    assert jnp.allclose(rbf, ref_r, atol=2e-2, rtol=2e-2)
    assert jnp.allclose(lbf, ref_l, atol=2e-2, rtol=2e-2)

    print("KERNEL_OK")
</pallas_src>

<mosaic_0001>
module attributes {stable_mosaic.version = 11 : i64} {
  func.func @_dtree_kernel_single(%arg0: i32, %arg1: i32, %arg2: memref<8x1024xf32, #tpu.memory_space<vmem>>, %arg3: memref<1024x128xf32, #tpu.memory_space<vmem>>, %arg4: memref<8x1xf32, #tpu.memory_space<vmem>>, %arg5: memref<8x128xf32, #tpu.memory_space<vmem>>) attributes {dimension_semantics = [#tpu.dimension_semantics<parallel>, #tpu.dimension_semantics<parallel>], iteration_bounds = array<i64: 1, 1>, scalar_prefetch = 0 : i64, scratch_operands = 0 : i64, tpu.core_type = #tpu.core_type<tc>, window_params = [{transform_indices = @transform_0, window_bounds = array<i64: 8, 1024>}, {transform_indices = @transform_1, window_bounds = array<i64: 1024, 128>}, {transform_indices = @transform_2, window_bounds = array<i64: 8, 1>}, {transform_indices = @transform_3, window_bounds = array<i64: 8, 128>}]} {
    %c0 = arith.constant 0 : index
    %c0_0 = arith.constant 0 : index
    %0 = vector.load %arg2[%c0, %c0_0] : memref<8x1024xf32, #tpu.memory_space<vmem>>, vector<8x1024xf32>
    %c0_1 = arith.constant 0 : index
    %c0_2 = arith.constant 0 : index
    %1 = vector.load %arg3[%c0_1, %c0_2] : memref<1024x128xf32, #tpu.memory_space<vmem>>, vector<1024x128xf32>
    %cst = arith.constant dense<0.000000e+00> : vector<8x128xf32>
    %2 = tpu.matmul %0, %1, %cst {dimension_numbers = #tpu.dot_dimension_numbers<[1], [0], [0], [1], [0, 0, 1, 1], [], []>} : vector<8x1024xf32>, vector<1024x128xf32>, vector<8x128xf32> -> vector<8x128xf32>
    %c0_3 = arith.constant 0 : index
    %c0_4 = arith.constant 0 : index
    %3 = vector.load %arg4[%c0_3, %c0_4] : memref<8x1xf32, #tpu.memory_space<vmem>>, vector<8x1xf32>
    %4 = vector.broadcast %3 : vector<8x1xf32> to vector<8x128xf32>
    %5 = arith.mulf %2, %4 : vector<8x128xf32>
    %cst_5 = arith.constant 5.000000e-01 : f32
    %6 = vector.broadcast %cst_5 : f32 to vector<8x128xf32>
    %7 = arith.subf %6, %5 : vector<8x128xf32>
    %c0_6 = arith.constant 0 : index
    %c0_7 = arith.constant 0 : index
    %8 = vector.load %arg5[%c0_6, %c0_7] : memref<8x128xf32, #tpu.memory_space<vmem>>, vector<8x128xf32>
    tpu.vector_store %arg5[%c0_6, %c0_7], %7 {strides = array<i32>} : memref<8x128xf32, #tpu.memory_space<vmem>>, vector<8x128xf32>,
    return
  }
  func.func @transform_0(%arg0: i32, %arg1: i32) -> (i32, i32) {
    %c0_i32 = arith.constant 0 : i32
    %c0_i32_0 = arith.constant 0 : i32
    return %arg0, %c0_i32 : i32, i32
  }
  func.func @transform_1(%arg0: i32, %arg1: i32) -> (i32, i32) {
    %c0_i32 = arith.constant 0 : i32
    %c0_i32_0 = arith.constant 0 : i32
    return %c0_i32, %arg1 : i32, i32
  }
  func.func @transform_2(%arg0: i32, %arg1: i32) -> (i32, i32) {
    %c0_i32 = arith.constant 0 : i32
    %c0_i32_0 = arith.constant 0 : i32
    return %arg0, %c0_i32 : i32, i32
  }
  func.func @transform_3(%arg0: i32, %arg1: i32) -> (i32, i32) {
    %c0_i32 = arith.constant 0 : i32
    return %arg0, %arg1 : i32, i32
  }
}

</mosaic_0001>

<bundles_post_ra>
// kernel: dtree_nodes_forward.1
= control target key start
LH: loop header
LB: loop body
LE: loop exit
PB: predicated region body
PF: predicated region fallthrough
CT: control target
= control target key end

     0   :  { %v713_v3 = vmov 0   ;;  %s1148_s1 = inlined_call_operand.vmem [shape: f32[1024,128], index: 1, kind: input, shape index: {}]   ;;  %s1149_s0 = inlined_call_operand.vmem [shape: f32[8,1024], index: 0, kind: input, shape index: {}]   ;;  %s1150_s2 = inlined_call_operand.vmem [shape: f32[8,1], index: 2, kind: input, shape index: {}]   ;;  %s1151_s3 = inlined_call_operand.vmem [shape: f32[8,128], index: 3, kind: output, shape index: {}]  }
   0x1   :  { %v38_v0 = vld [vmem:[%s1148_s1 + $0x80] sm:$0xff]  ;;  %v39_v1 = vld [vmem:[%s1148_s1 + $0x88] sm:$0xff]  ;;  %712 = vset.pattern.permute.xlu0 %v713_v3  ;;  %v40_v12 = vld [vmem:[%s1148_s1 + $0x90] sm:$0xff] }
   0x2   :  { %v70_v2 = vld [vmem:[%s1148_s1 + $0x180] sm:$0xff]  ;;  %v583_v4 = vpack.c.bf16 %v39_v1, %v38_v0  ;;  %v71_v5 = vld [vmem:[%s1148_s1 + $0x188] sm:$0xff]  ;;  %v41_v14 = vld [vmem:[%s1148_s1 + $0x98] sm:$0xff] }
   0x3   :  { %v22_v6 = vld [vmem:[%s1148_s1] sm:$0xff]  ;;  %v23_v7 = vld [vmem:[%s1148_s1 + $0x8] sm:$0xff]  ;;  %v615_v8 = vpack.c.bf16 %v71_v5, %v70_v2  ;;  %v72_v15 = vld [vmem:[%s1148_s1 + $0x190] sm:$0xff]  ;;  %v587_v17 = vpack.c.bf16 %v41_v14, %v40_v12 }
   0x4   :  { %v585_v9 = vpack.c.bf16 %v23_v7, %v22_v6  ;;  %v54_v10 = vld [vmem:[%s1148_s1 + $0x100] sm:$0xff]  ;;  %v55_v11 = vld [vmem:[%s1148_s1 + $0x108] sm:$0xff]  ;;  %584 = vmatprep.subr.bf16.mxu0 %v583_v4  ;;  %v73_v16 = vld [vmem:[%s1148_s1 + $0x198] sm:$0xff] }
   0x5   :  { %v617_v13 = vpack.c.bf16 %v55_v11, %v54_v10  ;;  %616 = vmatprep.subr.bf16.mxu1 %v615_v8  ;;  %v619_v18 = vpack.c.bf16 %v73_v16, %v72_v15  ;;  %v24_v19 = vld [vmem:[%s1148_s1 + $0x10] sm:$0xff]  ;;  %v25_v20 = vld [vmem:[%s1148_s1 + $0x18] sm:$0xff]  ;;  %v42_v24 = vld [vmem:[%s1148_s1 + $0xa0] sm:$0xff] }
   0x6   :  { %586 = vmatpush3.bf16.msra.mxu0 %v585_v9  ;;  %v56_v21 = vld [vmem:[%s1148_s1 + $0x110] sm:$0xff]  ;;  %v589_v22 = vpack.c.bf16 %v25_v20, %v24_v19  ;;  %v57_v23 = vld [vmem:[%s1148_s1 + $0x118] sm:$0xff]  ;;  %v43_v25 = vld [vmem:[%s1148_s1 + $0xa8] sm:$0xff] }
   0x7   :  { %618 = vmatpush3.bf16.msra.mxu1 %v617_v13  ;;  %588 = vmatprep.subr.bf16.mxu0 %v587_v17  ;;  %v621_v26 = vpack.c.bf16 %v57_v23, %v56_v21  ;;  %v591_v27 = vpack.c.bf16 %v43_v25, %v42_v24  ;;  %v74_v28 = vld [vmem:[%s1148_s1 + $0x1a0] sm:$0xff]  ;;  %v75_v29 = vld [vmem:[%s1148_s1 + $0x1a8] sm:$0xff]  ;;  %v44_v36 = vld [vmem:[%s1148_s1 + $0xb0] sm:$0xff] }
   0x8   :  { %620 = vmatprep.subr.bf16.mxu1 %v619_v18  ;;  %v26_v30 = vld [vmem:[%s1148_s1 + $0x20] sm:$0xff]  ;;  %v623_v31 = vpack.c.bf16 %v75_v29, %v74_v28  ;;  %v27_v32 = vld [vmem:[%s1148_s1 + $0x28] sm:$0xff]  ;;  %v45_v37 = vld [vmem:[%s1148_s1 + $0xb8] sm:$0xff] }
   0x9   :  { %v58_v33 = vld [vmem:[%s1148_s1 + $0x120] sm:$0xff]  ;;  %v59_v34 = vld [vmem:[%s1148_s1 + $0x128] sm:$0xff]  ;;  %v593_v35 = vpack.c.bf16 %v27_v32, %v26_v30  ;;  %v76_v38 = vld [vmem:[%s1148_s1 + $0x1b0] sm:$0xff]  ;;  %v595_v40 = vpack.c.bf16 %v45_v37, %v44_v36 }
   0xa   :  { %590 = vmatpush3.bf16.msra.mxu0 %v589_v22  ;;  %v625_v39 = vpack.c.bf16 %v59_v34, %v58_v33  ;;  %v77_v41 = vld [vmem:[%s1148_s1 + $0x1b8] sm:$0xff]  ;;  %v28_v42 = vld [vmem:[%s1148_s1 + $0x30] sm:$0xff]  ;;  %v46_v47 = vld [vmem:[%s1148_s1 + $0xc0] sm:$0xff] }
   0xb   :  { %622 = vmatpush3.bf16.msra.mxu1 %v621_v26  ;;  %592 = vmatprep.subr.bf16.mxu0 %v591_v27  ;;  %v29_v43 = vld [vmem:[%s1148_s1 + $0x38] sm:$0xff]  ;;  %v627_v44 = vpack.c.bf16 %v77_v41, %v76_v38  ;;  %v60_v45 = vld [vmem:[%s1148_s1 + $0x130] sm:$0xff]  ;;  %v47_v48 = vld [vmem:[%s1148_s1 + $0xc8] sm:$0xff] }
   0xc   :  { %624 = vmatprep.subr.bf16.mxu1 %v623_v31  ;;  %v61_v46 = vld [vmem:[%s1148_s1 + $0x138] sm:$0xff]  ;;  %v78_v49 = vld [vmem:[%s1148_s1 + $0x1c0] sm:$0xff]  ;;  %v79_v50 = vld [vmem:[%s1148_s1 + $0x1c8] sm:$0xff]  ;;  %v597_v51 = vpack.c.bf16 %v29_v43, %v28_v42  ;;  %v599_v53 = vpack.c.bf16 %v47_v48, %v46_v47 }
   0xd   :  { %v629_v52 = vpack.c.bf16 %v61_v46, %v60_v45  ;;  %v30_v54 = vld [vmem:[%s1148_s1 + $0x40] sm:$0xff]  ;;  %v31_v55 = vld [vmem:[%s1148_s1 + $0x48] sm:$0xff]  ;;  %v631_v57 = vpack.c.bf16 %v79_v50, %v78_v49  ;;  %v48_v59 = vld [vmem:[%s1148_s1 + $0xd0] sm:$0xff] }
   0xe   :  { %594 = vmatpush3.bf16.msra.mxu0 %v593_v35  ;;  %v62_v56 = vld [vmem:[%s1148_s1 + $0x140] sm:$0xff]  ;;  %v63_v58 = vld [vmem:[%s1148_s1 + $0x148] sm:$0xff]  ;;  %v49_v60 = vld [vmem:[%s1148_s1 + $0xd8] sm:$0xff]  ;;  %v601_v63 = vpack.c.bf16 %v31_v55, %v30_v54 }
   0xf   :  { %626 = vmatpush3.bf16.msra.mxu1 %v625_v39  ;;  %596 = vmatprep.subr.bf16.mxu0 %v595_v40  ;;  %v80_v61 = vld [vmem:[%s1148_s1 + $0x1d0] sm:$0xff]  ;;  %v81_v62 = vld [vmem:[%s1148_s1 + $0x1d8] sm:$0xff]  ;;  %v633_v0 = vpack.c.bf16 %v63_v58, %v62_v56  ;;  %v603_v1 = vpack.c.bf16 %v49_v60, %v48_v59  ;;  %v50_v7 = vld [vmem:[%s1148_s1 + $0xe0] sm:$0xff] }
  0x10   :  { %628 = vmatprep.subr.bf16.mxu1 %v627_v44  ;;  %v32_v2 = vld [vmem:[%s1148_s1 + $0x50] sm:$0xff]  ;;  %v33_v3 = vld [vmem:[%s1148_s1 + $0x58] sm:$0xff]  ;;  %v635_v5 = vpack.c.bf16 %v81_v62, %v80_v61  ;;  %v51_v8 = vld [vmem:[%s1148_s1 + $0xe8] sm:$0xff] }
  0x11   :  { %v64_v4 = vld [vmem:[%s1148_s1 + $0x150] sm:$0xff]  ;;  %v65_v6 = vld [vmem:[%s1148_s1 + $0x158] sm:$0xff]  ;;  %v82_v9 = vld [vmem:[%s1148_s1 + $0x1e0] sm:$0xff]  ;;  %v605_v11 = vpack.c.bf16 %v33_v3, %v32_v2  ;;  %v607_v15 = vpack.c.bf16 %v51_v8, %v50_v7 }
  0x12   :  { %598 = vmatpush3.bf16.msra.mxu0 %v597_v51  ;;  %v83_v10 = vld [vmem:[%s1148_s1 + $0x1e8] sm:$0xff]  ;;  %v34_v12 = vld [vmem:[%s1148_s1 + $0x60] sm:$0xff]  ;;  %v637_v14 = vpack.c.bf16 %v65_v6, %v64_v4  ;;  %v17_v18 = vld [vmem:[%s1149_s0 + $0x18] sm:$0xff] }
  0x13   :  { %630 = vmatpush3.bf16.msra.mxu1 %v629_v52  ;;  %600 = vmatprep.subr.bf16.mxu0 %v599_v53  ;;  %v35_v13 = vld [vmem:[%s1148_s1 + $0x68] sm:$0xff]  ;;  %v66_v16 = vld [vmem:[%s1148_s1 + $0x160] sm:$0xff]  ;;  %v639_v19 = vpack.c.bf16 %v83_v10, %v82_v9  ;;  %v52_v21 = vld [vmem:[%s1148_s1 + $0xf0] sm:$0xff] }
  0x14   :  { %632 = vmatprep.subr.bf16.mxu1 %v631_v57  ;;  %v15_v17 = vld [vmem:[%s1149_s0 + $0x8] sm:$0xff]  ;;  %v53_v22 = vld [vmem:[%s1148_s1 + $0xf8] sm:$0xff]  ;;  %v84_v23 = vld [vmem:[%s1148_s1 + $0x1f0] sm:$0xff]  ;;  %284 = vmatprep.mubr.f32.mxu1 %v17_v18  ;;  %v609_v25 = vpack.c.bf16 %v35_v13, %v34_v12 }
  0x15   :  { %v67_v20 = vld [vmem:[%s1148_s1 + $0x168] sm:$0xff]  ;;  %214 = vmatprep.mubr.f32.mxu0 %v15_v17  ;;  %v85_v24 = vld [vmem:[%s1148_s1 + $0x1f8] sm:$0xff]  ;;  %v611_v27 = vpack.c.bf16 %v53_v22, %v52_v21  ;;  %v36_v28 = vld [vmem:[%s1148_s1 + $0x70] sm:$0xff] }
  0x16   :  { %602 = vmatpush3.bf16.msra.mxu0 %v601_v63  ;;  %v641_v26 = vpack.c.bf16 %v67_v20, %v66_v16  ;;  %v37_v29 = vld [vmem:[%s1148_s1 + $0x78] sm:$0xff]  ;;  %v68_v30 = vld [vmem:[%s1148_s1 + $0x170] sm:$0xff]  ;;  %v643_v31 = vpack.c.bf16 %v85_v24, %v84_v23  ;;  %v102_v33 = vld [vmem:[%s1148_s1 + $0x280] sm:$0xff] }
  0x17   :  { %634 = vmatpush3.bf16.msra.mxu1 %v633_v0  ;;  %604 = vmatprep.subr.bf16.mxu0 %v603_v1  ;;  %v69_v32 = vld [vmem:[%s1148_s1 + $0x178] sm:$0xff]  ;;  %v103_v34 = vld [vmem:[%s1148_s1 + $0x288] sm:$0xff]  ;;  %v134_v35 = vld [vmem:[%s1148_s1 + $0x380] sm:$0xff]  ;;  %v613_v37 = vpack.c.bf16 %v37_v29, %v36_v28 }
  0x18   :  { %636 = vmatprep.subr.bf16.mxu1 %v635_v5  ;;  %v135_v36 = vld [vmem:[%s1148_s1 + $0x388] sm:$0xff]  ;;  %v645_v38 = vpack.c.bf16 %v69_v32, %v68_v30  ;;  %v647_v39 = vpack.c.bf16 %v103_v34, %v102_v33  ;;  %v86_v40 = vld [vmem:[%s1148_s1 + $0x200] sm:$0xff]  ;;  %v104_v45 = vld [vmem:[%s1148_s1 + $0x290] sm:$0xff] }
  0x19   :  { %v87_v41 = vld [vmem:[%s1148_s1 + $0x208] sm:$0xff]  ;;  %v118_v42 = vld [vmem:[%s1148_s1 + $0x300] sm:$0xff]  ;;  %v679_v43 = vpack.c.bf16 %v135_v36, %v134_v35  ;;  %v105_v46 = vld [vmem:[%s1148_s1 + $0x298] sm:$0xff] }
  0x1a   :  { %606 = vmatpush3.bf16.msra.mxu0 %v605_v11  ;;  %v119_v44 = vld [vmem:[%s1148_s1 + $0x308] sm:$0xff]  ;;  %v136_v47 = vld [vmem:[%s1148_s1 + $0x390] sm:$0xff]  ;;  %v137_v48 = vld [vmem:[%s1148_s1 + $0x398] sm:$0xff]  ;;  %v649_v51 = vpack.c.bf16 %v87_v41, %v86_v40  ;;  %v651_v53 = vpack.c.bf16 %v105_v46, %v104_v45 }
  0x1b   :  { %638 = vmatpush3.bf16.msra.mxu1 %v637_v14  ;;  %608 = vmatprep.subr.bf16.mxu0 %v607_v15  ;;  %v14_v49 = vld [vmem:[%s1149_s0] sm:$0xff]  ;;  %v16_v50 = vld [vmem:[%s1149_s0 + $0x10] sm:$0xff]  ;;  %v681_v52 = vpack.c.bf16 %v119_v44, %v118_v42  ;;  %v89_v55 = vld [vmem:[%s1148_s1 + $0x218] sm:$0xff]  ;;  %v683_v57 = vpack.c.bf16 %v137_v48, %v136_v47 }
  0x1c   :  { %640 = vmatprep.subr.bf16.mxu1 %v639_v19  ;;  %v88_v54 = vld [vmem:[%s1148_s1 + $0x210] sm:$0xff]  ;;  %v121_v58 = vld [vmem:[%s1148_s1 + $0x318] sm:$0xff]  ;;  %v106_v59 = vld [vmem:[%s1148_s1 + $0x2a0] sm:$0xff] }
  0x1d   :  { %v120_v56 = vld [vmem:[%s1148_s1 + $0x310] sm:$0xff]  ;;  %v107_v60 = vld [vmem:[%s1148_s1 + $0x2a8] sm:$0xff]  ;;  %v138_v61 = vld [vmem:[%s1148_s1 + $0x3a0] sm:$0xff]  ;;  %v653_v63 = vpack.c.bf16 %v89_v55, %v88_v54 }
  0x1e   :  { %610 = vmatpush3.bf16.msra.mxu0 %v609_v25  ;;  %v139_v62 = vld [vmem:[%s1148_s1 + $0x3a8] sm:$0xff]  ;;  %v685_v0 = vpack.c.bf16 %v121_v58, %v120_v56  ;;  %v655_v1 = vpack.c.bf16 %v107_v60, %v106_v59  ;;  %v90_v2 = vld [vmem:[%s1148_s1 + $0x220] sm:$0xff]  ;;  %v108_v7 = vld [vmem:[%s1148_s1 + $0x2b0] sm:$0xff] }
  0x1f   :  { %642 = vmatpush3.bf16.msra.mxu1 %v641_v26  ;;  %612 = vmatprep.subr.bf16.mxu0 %v611_v27  ;;  %v91_v3 = vld [vmem:[%s1148_s1 + $0x228] sm:$0xff]  ;;  %v122_v4 = vld [vmem:[%s1148_s1 + $0x320] sm:$0xff]  ;;  %v687_v5 = vpack.c.bf16 %v139_v62, %v138_v61  ;;  %v109_v8 = vld [vmem:[%s1148_s1 + $0x2b8] sm:$0xff] }
  0x20   :  { %644 = vmatprep.subr.bf16.mxu1 %v643_v31  ;;  %v123_v6 = vld [vmem:[%s1148_s1 + $0x328] sm:$0xff]  ;;  %v140_v9 = vld [vmem:[%s1148_s1 + $0x3b0] sm:$0xff]  ;;  %v141_v10 = vld [vmem:[%s1148_s1 + $0x3b8] sm:$0xff]  ;;  %v657_v11 = vpack.c.bf16 %v91_v3, %v90_v2  ;;  %v659_v13 = vpack.c.bf16 %v109_v8, %v108_v7 }
  0x21   :  { %v689_v12 = vpack.c.bf16 %v123_v6, %v122_v4  ;;  %v92_v14 = vld [vmem:[%s1148_s1 + $0x230] sm:$0xff]  ;;  %v93_v15 = vld [vmem:[%s1148_s1 + $0x238] sm:$0xff]  ;;  %v691_v17 = vpack.c.bf16 %v141_v10, %v140_v9  ;;  %v110_v19 = vld [vmem:[%s1148_s1 + $0x2c0] sm:$0xff] }
  0x22   :  { %614 = vmatpush3.bf16.msra.mxu0 %v613_v37  ;;  %v124_v16 = vld [vmem:[%s1148_s1 + $0x330] sm:$0xff]  ;;  %v125_v18 = vld [vmem:[%s1148_s1 + $0x338] sm:$0xff]  ;;  %v111_v20 = vld [vmem:[%s1148_s1 + $0x2c8] sm:$0xff]  ;;  %v661_v23 = vpack.c.bf16 %v93_v15, %v92_v14 }
  0x23   :  { %646 = vmatpush3.bf16.msra.mxu1 %v645_v38  ;;  %648 = vmatprep.subr.bf16.mxu0 %v647_v39  ;;  %v142_v21 = vld [vmem:[%s1148_s1 + $0x3c0] sm:$0xff]  ;;  %v143_v22 = vld [vmem:[%s1148_s1 + $0x3c8] sm:$0xff]  ;;  %v21_v26 = vld [vmem:[%s1149_s0 + $0x38] sm:$0xff]  ;;  %v693_v27 = vpack.c.bf16 %v125_v18, %v124_v16  ;;  %v663_v28 = vpack.c.bf16 %v111_v20, %v110_v19 }
  0x24   :  { %680 = vmatprep.subr.bf16.mxu1 %v679_v43  ;;  %v94_v24 = vld [vmem:[%s1148_s1 + $0x240] sm:$0xff]  ;;  %v19_v25 = vld [vmem:[%s1149_s0 + $0x28] sm:$0xff]  ;;  %v695_v32 = vpack.c.bf16 %v143_v22, %v142_v21  ;;  %v112_v34 = vld [vmem:[%s1148_s1 + $0x2d0] sm:$0xff] }
  0x25   :  { %215 = vmatmul.mubr.f32.vlgmr.msra.gmra.mrb[0].mxu0 %v14_v49  ;;  %v95_v29 = vld [vmem:[%s1148_s1 + $0x248] sm:$0xff]  ;;  %v126_v30 = vld [vmem:[%s1148_s1 + $0x340] sm:$0xff]  ;;  %v113_v35 = vld [vmem:[%s1148_s1 + $0x2d8] sm:$0xff] }
  0x26   :  { %285 = vmatmul.mubr.f32.vlgmr.msra.gmra.mrb[0].mxu1 %v16_v50  ;;  %650 = vmatpush3.bf16.msra.mxu0 %v649_v51  ;;  %v430_v31 = vld [vmem:[%s1150_s2] sm:$0xff]  ;;  %v127_v33 = vld [vmem:[%s1148_s1 + $0x348] sm:$0xff]  ;;  %v144_v36 = vld [vmem:[%s1148_s1 + $0x3d0] sm:$0xff]  ;;  %v665_v38 = vpack.c.bf16 %v95_v29, %v94_v24  ;;  %v667_v40 = vpack.c.bf16 %v113_v35, %v112_v34 }
  0x27   :  { %682 = vmatpush3.bf16.msra.mxu1 %v681_v52  ;;  %652 = vmatprep.subr.bf16.mxu0 %v651_v53  ;;  %v145_v37 = vld [vmem:[%s1148_s1 + $0x3d8] sm:$0xff]  ;;  %v697_v39 = vpack.c.bf16 %v127_v33, %v126_v30  ;;  %v96_v41 = vld [vmem:[%s1148_s1 + $0x250] sm:$0xff]  ;;  %v114_v46 = vld [vmem:[%s1148_s1 + $0x2e0] sm:$0xff] }
  0x28   :  { %684 = vmatprep.subr.bf16.mxu1 %v683_v57  ;;  %354 = vmatprep.mubr.f32.mxu0 %v19_v25  ;;  %v97_v42 = vld [vmem:[%s1148_s1 + $0x258] sm:$0xff]  ;;  %v128_v43 = vld [vmem:[%s1148_s1 + $0x350] sm:$0xff]  ;;  %v699_v44 = vpack.c.bf16 %v145_v37, %v144_v36  ;;  %v115_v47 = vld [vmem:[%s1148_s1 + $0x2e8] sm:$0xff] }
  0x29   :  { %424 = vmatprep.mubr.f32.mxu1 %v21_v26  ;;  %433 = vperm.xlu0 %712, %v430_v31   ;;  %v129_v45 = vld [vmem:[%s1148_s1 + $0x358] sm:$0xff]  ;;  %v146_v48 = vld [vmem:[%s1148_s1 + $0x3e0] sm:$0xff]  ;;  %v147_v49 = vld [vmem:[%s1148_s1 + $0x3e8] sm:$0xff]  ;;  %v669_v50 = vpack.c.bf16 %v97_v42, %v96_v41  ;;  %v671_v52 = vpack.c.bf16 %v115_v47, %v114_v46 }
  0x2a   :  { %654 = vmatpush3.bf16.msra.mxu0 %v653_v63  ;;  %v701_v51 = vpack.c.bf16 %v129_v45, %v128_v43  ;;  %v98_v53 = vld [vmem:[%s1148_s1 + $0x260] sm:$0xff]  ;;  %v99_v54 = vld [vmem:[%s1148_s1 + $0x268] sm:$0xff]  ;;  %v703_v56 = vpack.c.bf16 %v147_v49, %v146_v48  ;;  %v116_v58 = vld [vmem:[%s1148_s1 + $0x2f0] sm:$0xff] }
  0x2b   :  { %686 = vmatpush3.bf16.msra.mxu1 %v685_v0  ;;  %656 = vmatprep.subr.bf16.mxu0 %v655_v1  ;;  %v130_v55 = vld [vmem:[%s1148_s1 + $0x360] sm:$0xff]  ;;  %v131_v57 = vld [vmem:[%s1148_s1 + $0x368] sm:$0xff]  ;;  %v117_v59 = vld [vmem:[%s1148_s1 + $0x2f8] sm:$0xff]  ;;  %v673_v62 = vpack.c.bf16 %v99_v54, %v98_v53 }
  0x2c   :  { %688 = vmatprep.subr.bf16.mxu1 %v687_v5  ;;  %v148_v60 = vld [vmem:[%s1148_s1 + $0x3f0] sm:$0xff]  ;;  %v149_v61 = vld [vmem:[%s1148_s1 + $0x3f8] sm:$0xff]  ;;  %v705_v63 = vpack.c.bf16 %v131_v57, %v130_v55  ;;  %v675_v0 = vpack.c.bf16 %v117_v59, %v116_v58  ;;  %v18_v8 = vld [vmem:[%s1149_s0 + $0x20] sm:$0xff] }
  0x2d   :  { %v100_v1 = vld [vmem:[%s1148_s1 + $0x270] sm:$0xff]  ;;  %v101_v2 = vld [vmem:[%s1148_s1 + $0x278] sm:$0xff]  ;;  %v707_v3 = vpack.c.bf16 %v149_v61, %v148_v60 }
  0x2e   :  { %658 = vmatpush3.bf16.msra.mxu0 %v657_v11  ;;  %v132_v4 = vld [vmem:[%s1148_s1 + $0x370] sm:$0xff]  ;;  %v133_v5 = vld [vmem:[%s1148_s1 + $0x378] sm:$0xff]  ;;  %v677_v6 = vpack.c.bf16 %v101_v2, %v100_v1 }
  0x2f   :  { %690 = vmatpush3.bf16.msra.mxu1 %v689_v12  ;;  %660 = vmatprep.subr.bf16.mxu0 %v659_v13  ;;  %v709_v7 = vpack.c.bf16 %v133_v5, %v132_v4  ;;  %v20_v9 = vld [vmem:[%s1149_s0 + $0x30] sm:$0xff] }
  0x30   :  { %692 = vmatprep.subr.bf16.mxu1 %v691_v17 }
  0x32   :  { %662 = vmatpush3.bf16.msra.mxu0 %v661_v23 }
  0x33   :  { %694 = vmatpush3.bf16.msra.mxu1 %v693_v27  ;;  %664 = vmatprep.subr.bf16.mxu0 %v663_v28 }
  0x34   :  { %696 = vmatprep.subr.bf16.mxu1 %v695_v32 }
  0x36   :  { %666 = vmatpush3.bf16.msra.mxu0 %v665_v38 }
  0x37   :  { %698 = vmatpush3.bf16.msra.mxu1 %v697_v39  ;;  %668 = vmatprep.subr.bf16.mxu0 %v667_v40 }
  0x38   :  { %700 = vmatprep.subr.bf16.mxu1 %v699_v44 }
  0x3a   :  { %670 = vmatpush3.bf16.msra.mxu0 %v669_v50 }
  0x3b   :  { %702 = vmatpush3.bf16.msra.mxu1 %v701_v51  ;;  %672 = vmatprep.subr.bf16.mxu0 %v671_v52 }
  0x3c   :  { %704 = vmatprep.subr.bf16.mxu1 %v703_v56 }
  0x3e   :  { %674 = vmatpush3.bf16.msra.mxu0 %v673_v62 }
  0x3f   :  { %706 = vmatpush3.bf16.msra.mxu1 %v705_v63  ;;  %676 = vmatprep.subr.bf16.mxu0 %v675_v0 }
  0x40   :  { %708 = vmatprep.subr.bf16.mxu1 %v707_v3 }
  0x42   :  { %678 = vmatpush3.bf16.msra.mxu0 %v677_v6 }
  0x43   :  { %710 = vmatpush3.bf16.msra.mxu1 %v709_v7 }
  0x45   :  { %355 = vmatmul.mubr.f32.vlgmr.msra.gmra.mrb[2].mxu0 %v18_v8 }
  0x46   :  { %425 = vmatmul.mubr.f32.vlgmr.msra.gmra.mrb[2].mxu1 %v20_v9 }
  0xa8   :  { %v434_v24 = vpop.permute.xlu0 %433 }
  0xf8   :  { %v475_v10 = vpop.f32.mrb[0].mxu0 }
  0xf9   :  { %v510_v11 = vpop.f32.mrb[0].mxu1  ;;  %v476_v12 = vpop.f32.mrb[1].mxu0 }
  0xfa   :  { %v477_v13 = vadd.f32 %v476_v12, %v475_v10  ;;  %v511_v14 = vpop.f32.mrb[1].mxu1 }
  0xfb   :  { %v512_v15 = vadd.f32 %v511_v14, %v510_v11 }
  0xfd   :  { %v287_v16 = vadd.f32 %v512_v15, %v477_v13 }
 0x118   :  { %v545_v17 = vpop.f32.mrb[2].mxu0 }
 0x119   :  { %v546_v18 = vpop.f32.mrb[3].mxu0  ;;  %v580_v19 = vpop.f32.mrb[2].mxu1 }
 0x11a   :  { %v547_v20 = vadd.f32 %v546_v18, %v545_v17  ;;  %v581_v21 = vpop.f32.mrb[3].mxu1 }
 0x11b   :  { %v582_v22 = vadd.f32 %v581_v21, %v580_v19 }
 0x11c   :  { %v357_v23 = vadd.f32 %v547_v20, %v287_v16 }
 0x11e   :  { %v427_v25 = vadd.f32 %v582_v22, %v357_v23 }
 0x120   :  { %v436_v26 = vmul.f32 %v434_v24, %v427_v25 }
 0x122   :  { %v437_v27 = vsub.f32 0.5, %v436_v26 }
 0x124   :  { %438 = vst [vmem:[%s1151_s3] sm:$0xff] %v437_v27 }

</bundles_post_ra>
